<compile_context>
chip_gen: v7x
topology: tpu7x:2x2x1
jax: 0.10.0
libtpu: 0.0.40
codegen_flags: <defaults>
</compile_context>

<pallas_src>
import functools

import jax
import jax.numpy as jnp
from jax import lax
from jax.experimental import pallas as pl
from jax.experimental.pallas import tpu as pltpu

# Fixed "parameters" of GradLayer (deterministic, defined in-script).
#   kernel_v = [[0,-1,0],[0,0,0],[0,1,0]]  ->  x_v[i,j] = x[i+1,j] - x[i-1,j]
#   kernel_h = [[0,0,0],[-1,0,1],[0,0,0]]  ->  x_h[i,j] = x[i,j+1] - x[i,j-1]
_GRAY_COEFFS = (65.738 / 256.0, 129.057 / 256.0, 25.064 / 256.0)
_EPS = 1e-6


def _grad_loss_kernel(out_ref, gt_ref, v_ref, h_ref, gtv_ref, gth_ref,
                      loss_ref, *, H, W, flat, grad_dtype):
    TB, C = out_ref.shape[0], out_ref.shape[1]
    HW = H * W

    if flat:
        # Lane-dense flat view: each image/channel is an (R, 128) slab with
        # flat pixel index f = i*W + j = row*128 + lane.
        R = out_ref.shape[2]
        row = lax.broadcasted_iota(jnp.int32, (R, 128), 0)
        lane = lax.broadcasted_iota(jnp.int32, (R, 128), 1)
        fidx = row * 128 + lane
        # column index j; cheap special case when W divides 128 (no 32-bit div)
        jj = (lane % W) if (128 % W == 0) else (fidx % W)
        shape2d = (R, 128)
    else:
        # Factored boundary indices: (H,1) rows / (1,W) cols, broadcast inside
        # jnp.where (instead of four full (H,W) masks).
        ii = lax.broadcasted_iota(jnp.int32, (H, 1), 0)
        jj = lax.broadcasted_iota(jnp.int32, (1, W), 1)
        shape2d = (H, W)

    def to_gray(img_ref, b):
        if C == 3:
            return (img_ref[b, 0].astype(jnp.float32) * _GRAY_COEFFS[0]
                    + img_ref[b, 1].astype(jnp.float32) * _GRAY_COEFFS[1]
                    + img_ref[b, 2].astype(jnp.float32) * _GRAY_COEFFS[2])
        return img_ref[b, 0].astype(jnp.float32)

    def flat_shift(x, s):
        """Circular right shift by s of x viewed as the flat (H*W,) sequence.

        y_flat[f] = x_flat[(f - s) mod HW].  Positions that wrap (f < s) are
        always masked out by the boundary selects below.
        """
        s = s % HW
        k, m = divmod(s, 128)
        k = k % R
        a = pltpu.roll(x, k, 0) if k else x
        if m == 0:
            return a
        a = pltpu.roll(a, m, 1)
        b = pltpu.roll(a, 1, 0) if R > 1 else a
        return jnp.where(lane >= m, a, b)

    def grad_vh(g):
        """Zero-padded 3x3 gradient convs: x_v=x[i+1,j]-x[i-1,j], x_h=x[i,j+1]-x[i,j-1]."""
        if flat:
            g_dn = flat_shift(g, HW - W)      # x[i+1, j]
            g_up = flat_shift(g, W)           # x[i-1, j]
            g_rt = flat_shift(g, HW - 1)      # x[i, j+1]
            g_lt = flat_shift(g, 1)           # x[i, j-1]
            # i > 0  <=> f >= W ;  i < H-1 <=> f < H*W - W  (no division needed)
            x_v = (jnp.where(fidx < HW - W, g_dn, 0.0)
                   - jnp.where(fidx >= W, g_up, 0.0))
            x_h = (jnp.where(jj < W - 1, g_rt, 0.0)
                   - jnp.where(jj > 0, g_lt, 0.0))
        else:
            g_dn = pltpu.roll(g, H - 1, 0) if H > 1 else g
            g_up = pltpu.roll(g, 1, 0) if H > 1 else g
            g_rt = pltpu.roll(g, W - 1, 1) if W > 1 else g
            g_lt = pltpu.roll(g, 1, 1) if W > 1 else g
            x_v = (jnp.where(ii < H - 1, g_dn, 0.0)
                   - jnp.where(ii > 0, g_up, 0.0))
            x_h = (jnp.where(jj < W - 1, g_rt, 0.0)
                   - jnp.where(jj > 0, g_lt, 0.0))
        return x_v, x_h

    def body(b, acc):
        # "output" image: compute + store v/h immediately, keep only the mag.
        og = to_gray(out_ref, b)
        ov, oh = grad_vh(og)
        v_ref[b, 0] = ov.astype(grad_dtype)
        h_ref[b, 0] = oh.astype(grad_dtype)
        omag = jnp.sqrt(ov * ov + oh * oh + _EPS)

        # ground-truth image.
        gg = to_gray(gt_ref, b)
        gv, gh = grad_vh(gg)
        gtv_ref[b, 0] = gv.astype(grad_dtype)
        gth_ref[b, 0] = gh.astype(grad_dtype)
        gmag = jnp.sqrt(gv * gv + gh * gh + _EPS)

        # Map-accumulator: defer the cross-lane reduce to once per grid step.
        return acc + jnp.abs(omag - gmag)

    acc = lax.fori_loop(0, TB, body, jnp.zeros(shape2d, jnp.float32),
                        unroll=2 if TB > 1 else 1)

    # Per-step partial loss (distinct block every step -> "parallel"-safe grid).
    loss_ref[...] = jnp.broadcast_to(jnp.sum(acc), (1, 1, 1))


def _pick_batch_tile(N, per_elem_bytes, block_budget):
    """Largest divisor of N whose double-buffered blocks fit the budget.

    Capped at N//2 so the grid keeps >= 2 steps (shards across v7x's two TCs).
    """
    tb_cap = N // 2 if N >= 2 else 1
    tb = max(1, min(tb_cap, block_budget // max(per_elem_bytes, 1)))
    while N % tb:
        tb -= 1
    return tb


def grad_loss(output, gt_img, grad_dtype=None):
    """Pallas implementation of GradLoss.forward.

    Returns (loss, v, h, gt_v, gt_h) exactly like the PyTorch module:
      loss : scalar f32 = mean |grad_mag(output) - grad_mag(gt)|
      v, h, gt_v, gt_h : (N, 1, H, W) gradient maps.

    grad_dtype defaults to the input dtype (bf16 inputs -> bf16 gradient maps,
    halving HBM write traffic).  Pass jnp.float32 to force f32 maps like the
    PyTorch module regardless of input dtype.
    """
    assert output.shape == gt_img.shape
    N, C, H, W = output.shape
    assert C in (1, 3), "GradLayer only supports 1- or 3-channel inputs"
    if gt_img.dtype != output.dtype:
        gt_img = gt_img.astype(output.dtype)

    grad_dtype = jnp.dtype(output.dtype if grad_dtype is None else grad_dtype)
    in_itemsize = jnp.dtype(output.dtype).itemsize
    HW = H * W

    # Lane-dense path whenever W is lane-sparse but H*W tiles cleanly to 128.
    flat = (W % 128 != 0) and (HW % 128 == 0)

    # Generation-aware VMEM budgets (v5e/v6e: 128 MiB, v7x: 64 MiB physical).
    try:
        vmem_cap = int(getattr(pltpu.get_tpu_info(), "vmem_capacity_bytes",
                               128 * 1024 * 1024))
    except Exception:
        vmem_cap = 128 * 1024 * 1024
    vmem_ceiling = (vmem_cap * 3) // 4     # leave compiler/bookkeeping headroom
    block_budget = vmem_cap // 4           # budget for double-buffered blocks

    # Double-buffered block bytes per batch element: 2 input images + 4 grad maps.
    per_elem = 2 * (2 * C * HW * in_itemsize + 4 * HW * grad_dtype.itemsize)
    tb = _pick_batch_tile(N, per_elem, block_budget)
    block_bytes = tb * per_elem
    # Per-element f32 working set (bounded by the fori_loop, not scaled by tb).
    temp_bytes = 16 * HW * 4
    if block_bytes + temp_bytes > vmem_ceiling:
        # TODO(synk): H-tile with a 1-row halo (overlapping row windows or a
        # manual make_async_copy of the neighbour rows) so very large single
        # images fit v7x's 64 MiB physical VMEM.
        raise ValueError(
            f"GradLoss image (C,H,W)={(C, H, W)} too large for whole-image "
            f"VMEM blocks on this TPU ({block_bytes + temp_bytes} B needed, "
            f"ceiling {vmem_ceiling} B)")
    vmem_limit = int(min(max(block_bytes + temp_bytes + (4 << 20),
                             min(32 << 20, vmem_ceiling)),
                         vmem_ceiling))

    grid = (N // tb,)

    if flat:
        R = HW // 128
        out_in = output.reshape(N, C, R, 128)   # contiguous -> free reshape
        gt_in = gt_img.reshape(N, C, R, 128)
        img_blk, grad_blk = (tb, C, R, 128), (tb, 1, R, 128)
        grad_arr_shape = (N, 1, R, 128)
    else:
        out_in, gt_in = output, gt_img
        img_blk, grad_blk = (tb, C, H, W), (tb, 1, H, W)
        grad_arr_shape = (N, 1, H, W)

    img_spec = pl.BlockSpec(img_blk, lambda i: (i, 0, 0, 0))
    grad_spec = pl.BlockSpec(grad_blk, lambda i: (i, 0, 0, 0))
    loss_spec = pl.BlockSpec((1, 1, 1), lambda i: (i, 0, 0))

    grad_sd = jax.ShapeDtypeStruct(grad_arr_shape, grad_dtype)
    out_shapes = (grad_sd, grad_sd, grad_sd, grad_sd,
                  jax.ShapeDtypeStruct((grid[0], 1, 1), jnp.float32))

    kernel = functools.partial(_grad_loss_kernel, H=H, W=W, flat=flat,
                               grad_dtype=grad_dtype)

    v, h, gt_v, gt_h, loss_parts = pl.pallas_call(
        kernel,
        out_shape=out_shapes,
        grid_spec=pltpu.PrefetchScalarGridSpec(
            num_scalar_prefetch=0,
            grid=grid,
            in_specs=[img_spec, img_spec],
            out_specs=(grad_spec, grad_spec, grad_spec, grad_spec, loss_spec),
        ),
        compiler_params=pltpu.CompilerParams(
            dimension_semantics=("parallel",),
            vmem_limit_bytes=vmem_limit,
        ),
    )(out_in, gt_in)

    if flat:
        v = v.reshape(N, 1, H, W)
        h = h.reshape(N, 1, H, W)
        gt_v = gt_v.reshape(N, 1, H, W)
        gt_h = gt_h.reshape(N, 1, H, W)

    loss = jnp.sum(loss_parts) / (N * HW)   # nn.L1Loss(reduction='mean')
    return loss, v, h, gt_v, gt_h


def _grad_loss_ref(output, gt_img):
    """Pure-JAX reference (same math, no Pallas) for a sanity check."""
    def grad_layer(x):
        N, C, H, W = x.shape
        if C == 3:
            c = jnp.asarray(_GRAY_COEFFS, jnp.float32).reshape(1, 3, 1, 1)
            g = jnp.sum(x * c, axis=1, keepdims=True)
        else:
            g = x
        gp = jnp.pad(g, ((0, 0), (0, 0), (1, 1), (1, 1)))
        x_v = gp[:, :, 2:, 1:-1] - gp[:, :, :-2, 1:-1]
        x_h = gp[:, :, 1:-1, 2:] - gp[:, :, 1:-1, :-2]
        mag = jnp.sqrt(x_v ** 2 + x_h ** 2 + _EPS)
        return x_v, x_h, mag

    v, h, omag = grad_layer(output.astype(jnp.float32))
    gv, gh, gmag = grad_layer(gt_img.astype(jnp.float32))
    return jnp.mean(jnp.abs(omag - gmag)), v, h, gv, gh


if __name__ == "__main__":
    key = jax.random.PRNGKey(0)
    k1, k2, k3, k4 = jax.random.split(key, 4)

    # f32, W=16 -> lane-dense flat path; tb=1 so the grid has 2 steps.
    output = jax.random.uniform(k1, (2, 3, 16, 16), dtype=jnp.float32)
    gt_img = jax.random.uniform(k2, (2, 3, 16, 16), dtype=jnp.float32)
    loss, v, h, gt_v, gt_h = grad_loss(output, gt_img)
    jax.block_until_ready((loss, v, h, gt_v, gt_h))
    r_loss, r_v, r_h, r_gv, r_gh = _grad_loss_ref(output, gt_img)
    assert jnp.allclose(loss, r_loss, atol=1e-5), (loss, r_loss)
    assert jnp.allclose(v, r_v, atol=1e-5)
    assert jnp.allclose(h, r_h, atol=1e-5)
    assert jnp.allclose(gt_v, r_gv, atol=1e-5)
    assert jnp.allclose(gt_h, r_gh, atol=1e-5)

    # bf16 inputs -> bf16 gradient maps by default (halved HBM bytes); math
    # stays f32 in-kernel so the loss matches the f32 reference.
    out_bf, gt_bf = output.astype(jnp.bfloat16), gt_img.astype(jnp.bfloat16)
    loss_bf, v_bf, h_bf, gv_bf, gh_bf = grad_loss(out_bf, gt_bf)
    jax.block_until_ready((loss_bf, v_bf))
    rb = _grad_loss_ref(out_bf, gt_bf)
    assert v_bf.dtype == jnp.bfloat16
    assert jnp.allclose(loss_bf, rb[0], atol=1e-4), (loss_bf, rb[0])
    for got, want in zip((v_bf, h_bf, gv_bf, gh_bf), rb[1:]):
        assert jnp.allclose(got.astype(jnp.float32), want, atol=1e-2)

    # H*W not a multiple of 128 -> (H, W) fallback path; also exercises C == 1.
    out1 = jax.random.uniform(k3, (2, 1, 8, 24), dtype=jnp.float32)
    gt1 = jax.random.uniform(k4, (2, 1, 8, 24), dtype=jnp.float32)
    loss1, v1, h1, gv1, gh1 = grad_loss(out1, gt1)
    jax.block_until_ready((loss1, v1))
    r1 = _grad_loss_ref(out1, gt1)
    assert jnp.allclose(loss1, r1[0], atol=1e-5), (loss1, r1[0])
    for got, want in zip((v1, h1, gv1, gh1), r1[1:]):
        assert jnp.allclose(got, want, atol=1e-5)

    print("KERNEL_OK")
</pallas_src>

<mosaic_0001>
module attributes {stable_mosaic.version = 11 : i64} {
  func.func @_grad_loss_kernel(%arg0: i32, %arg1: memref<1x3x2x128xf32, #tpu.memory_space<vmem>>, %arg2: memref<1x3x2x128xf32, #tpu.memory_space<vmem>>, %arg3: memref<1x1x2x128xf32, #tpu.memory_space<vmem>>, %arg4: memref<1x1x2x128xf32, #tpu.memory_space<vmem>>, %arg5: memref<1x1x2x128xf32, #tpu.memory_space<vmem>>, %arg6: memref<1x1x2x128xf32, #tpu.memory_space<vmem>>, %arg7: memref<1x1x1xf32, #tpu.memory_space<vmem>>) attributes {dimension_semantics = [#tpu.dimension_semantics<parallel>], iteration_bounds = array<i64: 2>, scalar_prefetch = 0 : i64, scratch_operands = 0 : i64, tpu.core_type = #tpu.core_type<tc>, window_params = [{transform_indices = @transform_0, window_bounds = array<i64: 1, 3, 2, 128>}, {transform_indices = @transform_1, window_bounds = array<i64: 1, 3, 2, 128>}, {transform_indices = @transform_2, window_bounds = array<i64: 1, 1, 2, 128>}, {transform_indices = @transform_3, window_bounds = array<i64: 1, 1, 2, 128>}, {transform_indices = @transform_4, window_bounds = array<i64: 1, 1, 2, 128>}, {transform_indices = @transform_5, window_bounds = array<i64: 1, 1, 2, 128>}, {transform_indices = @transform_6, window_bounds = array<i64: 1, 1, 1>}]} {
    %0 = tpu.iota {dimensions = array<i32: 0>} : vector<2x128xi32>
    %1 = tpu.iota {dimensions = array<i32: 1>} : vector<2x128xi32>
    %c128_i32 = arith.constant 128 : i32
    %2 = vector.broadcast %c128_i32 : i32 to vector<2x128xi32>
    %3 = arith.muli %0, %2 : vector<2x128xi32>
    %4 = arith.addi %3, %1 : vector<2x128xi32>
    %c16_i32 = arith.constant 16 : i32
    %c0_i32 = arith.constant 0 : i32
    %5 = arith.cmpi eq, %c16_i32, %c0_i32 : i32
    %c1_i32 = arith.constant 1 : i32
    %6 = arith.select %5, %c1_i32, %c16_i32 : i32
    %7 = vector.broadcast %6 : i32 to vector<2x128xi32>
    %8 = arith.remsi %1, %7 : vector<2x128xi32>
    %c0_i32_0 = arith.constant 0 : i32
    %9 = vector.broadcast %c0_i32_0 : i32 to vector<2x128xi32>
    %10 = arith.cmpi ne, %8, %9 : vector<2x128xi32>
    %c0_i32_1 = arith.constant 0 : i32
    %11 = vector.broadcast %c0_i32_1 : i32 to vector<2x128xi32>
    %12 = arith.cmpi slt, %8, %11 : vector<2x128xi32>
    %c0_i32_2 = arith.constant 0 : i32
    %13 = arith.cmpi slt, %6, %c0_i32_2 : i32
    %14 = vector.broadcast %13 : i1 to vector<2x128xi1>
    %15 = vector.broadcast %14 : vector<2x128xi1> to vector<2x128xi1>
    %16 = arith.xori %12, %15 : vector<2x128xi1>
    %17 = arith.andi %16, %10 : vector<2x128xi1>
    %18 = vector.broadcast %6 : i32 to vector<2x128xi32>
    %19 = arith.addi %8, %18 : vector<2x128xi32>
    %20 = arith.select %17, %19, %8 : vector<2x128xi1>, vector<2x128xi32>
    %cst = arith.constant 0.000000e+00 : f32
    %21 = vector.broadcast %cst : f32 to vector<2x128xf32>
    %c0_i32_3 = arith.constant 0 : i32
    %22 = arith.index_cast %c0_i32_3 : i32 to index
    %c0 = arith.constant 0 : index
    %c0_4 = arith.constant 0 : index
    %c0_5 = arith.constant 0 : index
    %23 = vector.load %arg1[%22, %c0, %c0_4, %c0_5] : memref<1x3x2x128xf32, #tpu.memory_space<vmem>>, vector<1x1x2x128xf32>
    %24 = vector.shape_cast %23 : vector<1x1x2x128xf32> to vector<2x128xf32>
    %cst_6 = arith.constant 0.256789058 : f32
    %25 = vector.broadcast %cst_6 : f32 to vector<2x128xf32>
    %26 = arith.mulf %24, %25 : vector<2x128xf32>
    %27 = arith.index_cast %c0_i32_3 : i32 to index
    %c1 = arith.constant 1 : index
    %c0_7 = arith.constant 0 : index
    %c0_8 = arith.constant 0 : index
    %28 = vector.load %arg1[%27, %c1, %c0_7, %c0_8] : memref<1x3x2x128xf32, #tpu.memory_space<vmem>>, vector<1x1x2x128xf32>
    %29 = vector.shape_cast %28 : vector<1x1x2x128xf32> to vector<2x128xf32>
    %cst_9 = arith.constant 0.504128933 : f32
    %30 = vector.broadcast %cst_9 : f32 to vector<2x128xf32>
    %31 = arith.mulf %29, %30 : vector<2x128xf32>
    %32 = arith.addf %26, %31 : vector<2x128xf32>
    %33 = arith.index_cast %c0_i32_3 : i32 to index
    %c2 = arith.constant 2 : index
    %c0_10 = arith.constant 0 : index
    %c0_11 = arith.constant 0 : index
    %34 = vector.load %arg1[%33, %c2, %c0_10, %c0_11] : memref<1x3x2x128xf32, #tpu.memory_space<vmem>>, vector<1x1x2x128xf32>
    %35 = vector.shape_cast %34 : vector<1x1x2x128xf32> to vector<2x128xf32>
    %cst_12 = arith.constant 0.0979062467 : f32
    %36 = vector.broadcast %cst_12 : f32 to vector<2x128xf32>
    %37 = arith.mulf %35, %36 : vector<2x128xf32>
    %38 = arith.addf %32, %37 : vector<2x128xf32>
    %c1_i32_13 = arith.constant 1 : i32
    %39 = tpu.dynamic_rotate %38 by %c1_i32_13 dim 0 : vector<2x128xf32>, i32 -> vector<2x128xf32>
    %c112_i32 = arith.constant 112 : i32
    %40 = tpu.dynamic_rotate %39 by %c112_i32 dim 1 : vector<2x128xf32>, i32 -> vector<2x128xf32>
    %c1_i32_14 = arith.constant 1 : i32
    %41 = tpu.dynamic_rotate %40 by %c1_i32_14 dim 0 : vector<2x128xf32>, i32 -> vector<2x128xf32>
    %c112_i32_15 = arith.constant 112 : i32
    %42 = vector.broadcast %c112_i32_15 : i32 to vector<2x128xi32>
    %43 = arith.cmpi sge, %1, %42 : vector<2x128xi32>
    %44 = arith.select %43, %40, %41 : vector<2x128xi1>, vector<2x128xf32>
    %c16_i32_16 = arith.constant 16 : i32
    %45 = tpu.dynamic_rotate %38 by %c16_i32_16 dim 1 : vector<2x128xf32>, i32 -> vector<2x128xf32>
    %c1_i32_17 = arith.constant 1 : i32
    %46 = tpu.dynamic_rotate %45 by %c1_i32_17 dim 0 : vector<2x128xf32>, i32 -> vector<2x128xf32>
    %c16_i32_18 = arith.constant 16 : i32
    %47 = vector.broadcast %c16_i32_18 : i32 to vector<2x128xi32>
    %48 = arith.cmpi sge, %1, %47 : vector<2x128xi32>
    %49 = arith.select %48, %45, %46 : vector<2x128xi1>, vector<2x128xf32>
    %c1_i32_19 = arith.constant 1 : i32
    %50 = tpu.dynamic_rotate %38 by %c1_i32_19 dim 0 : vector<2x128xf32>, i32 -> vector<2x128xf32>
    %c127_i32 = arith.constant 127 : i32
    %51 = tpu.dynamic_rotate %50 by %c127_i32 dim 1 : vector<2x128xf32>, i32 -> vector<2x128xf32>
    %c1_i32_20 = arith.constant 1 : i32
    %52 = tpu.dynamic_rotate %51 by %c1_i32_20 dim 0 : vector<2x128xf32>, i32 -> vector<2x128xf32>
    %c127_i32_21 = arith.constant 127 : i32
    %53 = vector.broadcast %c127_i32_21 : i32 to vector<2x128xi32>
    %54 = arith.cmpi sge, %1, %53 : vector<2x128xi32>
    %55 = arith.select %54, %51, %52 : vector<2x128xi1>, vector<2x128xf32>
    %c1_i32_22 = arith.constant 1 : i32
    %56 = tpu.dynamic_rotate %38 by %c1_i32_22 dim 1 : vector<2x128xf32>, i32 -> vector<2x128xf32>
    %c1_i32_23 = arith.constant 1 : i32
    %57 = tpu.dynamic_rotate %56 by %c1_i32_23 dim 0 : vector<2x128xf32>, i32 -> vector<2x128xf32>
    %c1_i32_24 = arith.constant 1 : i32
    %58 = vector.broadcast %c1_i32_24 : i32 to vector<2x128xi32>
    %59 = arith.cmpi sge, %1, %58 : vector<2x128xi32>
    %60 = arith.select %59, %56, %57 : vector<2x128xi1>, vector<2x128xf32>
    %c240_i32 = arith.constant 240 : i32
    %61 = vector.broadcast %c240_i32 : i32 to vector<2x128xi32>
    %62 = arith.cmpi slt, %4, %61 : vector<2x128xi32>
    %cst_25 = arith.constant 0.000000e+00 : f32
    %63 = vector.broadcast %cst_25 : f32 to vector<2x128xf32>
    %64 = arith.select %62, %44, %63 : vector<2x128xi1>, vector<2x128xf32>
    %c16_i32_26 = arith.constant 16 : i32
    %65 = vector.broadcast %c16_i32_26 : i32 to vector<2x128xi32>
    %66 = arith.cmpi sge, %4, %65 : vector<2x128xi32>
    %cst_27 = arith.constant 0.000000e+00 : f32
    %67 = vector.broadcast %cst_27 : f32 to vector<2x128xf32>
    %68 = arith.select %66, %49, %67 : vector<2x128xi1>, vector<2x128xf32>
    %69 = arith.subf %64, %68 : vector<2x128xf32>
    %c15_i32 = arith.constant 15 : i32
    %70 = vector.broadcast %c15_i32 : i32 to vector<2x128xi32>
    %71 = arith.cmpi slt, %20, %70 : vector<2x128xi32>
    %cst_28 = arith.constant 0.000000e+00 : f32
    %72 = vector.broadcast %cst_28 : f32 to vector<2x128xf32>
    %73 = arith.select %71, %55, %72 : vector<2x128xi1>, vector<2x128xf32>
    %c0_i32_29 = arith.constant 0 : i32
    %74 = vector.broadcast %c0_i32_29 : i32 to vector<2x128xi32>
    %75 = arith.cmpi sgt, %20, %74 : vector<2x128xi32>
    %cst_30 = arith.constant 0.000000e+00 : f32
    %76 = vector.broadcast %cst_30 : f32 to vector<2x128xf32>
    %77 = arith.select %75, %60, %76 : vector<2x128xi1>, vector<2x128xf32>
    %78 = arith.subf %73, %77 : vector<2x128xf32>
    %79 = arith.index_cast %c0_i32_3 : i32 to index
    %c0_31 = arith.constant 0 : index
    %c0_32 = arith.constant 0 : index
    %c0_33 = arith.constant 0 : index
    %80 = vector.load %arg3[%79, %c0_31, %c0_32, %c0_33] : memref<1x1x2x128xf32, #tpu.memory_space<vmem>>, vector<1x1x2x128xf32>
    %81 = vector.shape_cast %80 : vector<1x1x2x128xf32> to vector<2x128xf32>
    %82 = vector.shape_cast %69 : vector<2x128xf32> to vector<1x1x2x128xf32>
    tpu.vector_store %arg3[%79, %c0_31, %c0_32, %c0_33], %82 {strides = array<i32>} : memref<1x1x2x128xf32, #tpu.memory_space<vmem>>, vector<1x1x2x128xf32>,
    %83 = arith.index_cast %c0_i32_3 : i32 to index
    %c0_34 = arith.constant 0 : index
    %c0_35 = arith.constant 0 : index
    %c0_36 = arith.constant 0 : index
    %84 = vector.load %arg4[%83, %c0_34, %c0_35, %c0_36] : memref<1x1x2x128xf32, #tpu.memory_space<vmem>>, vector<1x1x2x128xf32>
    %85 = vector.shape_cast %84 : vector<1x1x2x128xf32> to vector<2x128xf32>
    %86 = vector.shape_cast %78 : vector<2x128xf32> to vector<1x1x2x128xf32>
    tpu.vector_store %arg4[%83, %c0_34, %c0_35, %c0_36], %86 {strides = array<i32>} : memref<1x1x2x128xf32, #tpu.memory_space<vmem>>, vector<1x1x2x128xf32>,
    %87 = arith.mulf %69, %69 : vector<2x128xf32>
    %88 = arith.mulf %78, %78 : vector<2x128xf32>
    %89 = arith.addf %87, %88 : vector<2x128xf32>
    %cst_37 = arith.constant 9.99999997E-7 : f32
    %90 = vector.broadcast %cst_37 : f32 to vector<2x128xf32>
    %91 = arith.addf %89, %90 : vector<2x128xf32>
    %92 = math.sqrt %91 : vector<2x128xf32>
    %93 = arith.index_cast %c0_i32_3 : i32 to index
    %c0_38 = arith.constant 0 : index
    %c0_39 = arith.constant 0 : index
    %c0_40 = arith.constant 0 : index
    %94 = vector.load %arg2[%93, %c0_38, %c0_39, %c0_40] : memref<1x3x2x128xf32, #tpu.memory_space<vmem>>, vector<1x1x2x128xf32>
    %95 = vector.shape_cast %94 : vector<1x1x2x128xf32> to vector<2x128xf32>
    %cst_41 = arith.constant 0.256789058 : f32
    %96 = vector.broadcast %cst_41 : f32 to vector<2x128xf32>
    %97 = arith.mulf %95, %96 : vector<2x128xf32>
    %98 = arith.index_cast %c0_i32_3 : i32 to index
    %c1_42 = arith.constant 1 : index
    %c0_43 = arith.constant 0 : index
    %c0_44 = arith.constant 0 : index
    %99 = vector.load %arg2[%98, %c1_42, %c0_43, %c0_44] : memref<1x3x2x128xf32, #tpu.memory_space<vmem>>, vector<1x1x2x128xf32>
    %100 = vector.shape_cast %99 : vector<1x1x2x128xf32> to vector<2x128xf32>
    %cst_45 = arith.constant 0.504128933 : f32
    %101 = vector.broadcast %cst_45 : f32 to vector<2x128xf32>
    %102 = arith.mulf %100, %101 : vector<2x128xf32>
    %103 = arith.addf %97, %102 : vector<2x128xf32>
    %104 = arith.index_cast %c0_i32_3 : i32 to index
    %c2_46 = arith.constant 2 : index
    %c0_47 = arith.constant 0 : index
    %c0_48 = arith.constant 0 : index
    %105 = vector.load %arg2[%104, %c2_46, %c0_47, %c0_48] : memref<1x3x2x128xf32, #tpu.memory_space<vmem>>, vector<1x1x2x128xf32>
    %106 = vector.shape_cast %105 : vector<1x1x2x128xf32> to vector<2x128xf32>
    %cst_49 = arith.constant 0.0979062467 : f32
    %107 = vector.broadcast %cst_49 : f32 to vector<2x128xf32>
    %108 = arith.mulf %106, %107 : vector<2x128xf32>
    %109 = arith.addf %103, %108 : vector<2x128xf32>
    %c1_i32_50 = arith.constant 1 : i32
    %110 = tpu.dynamic_rotate %109 by %c1_i32_50 dim 0 : vector<2x128xf32>, i32 -> vector<2x128xf32>
    %c112_i32_51 = arith.constant 112 : i32
    %111 = tpu.dynamic_rotate %110 by %c112_i32_51 dim 1 : vector<2x128xf32>, i32 -> vector<2x128xf32>
    %c1_i32_52 = arith.constant 1 : i32
    %112 = tpu.dynamic_rotate %111 by %c1_i32_52 dim 0 : vector<2x128xf32>, i32 -> vector<2x128xf32>
    %c112_i32_53 = arith.constant 112 : i32
    %113 = vector.broadcast %c112_i32_53 : i32 to vector<2x128xi32>
    %114 = arith.cmpi sge, %1, %113 : vector<2x128xi32>
    %115 = arith.select %114, %111, %112 : vector<2x128xi1>, vector<2x128xf32>
    %c16_i32_54 = arith.constant 16 : i32
    %116 = tpu.dynamic_rotate %109 by %c16_i32_54 dim 1 : vector<2x128xf32>, i32 -> vector<2x128xf32>
    %c1_i32_55 = arith.constant 1 : i32
    %117 = tpu.dynamic_rotate %116 by %c1_i32_55 dim 0 : vector<2x128xf32>, i32 -> vector<2x128xf32>
    %c16_i32_56 = arith.constant 16 : i32
    %118 = vector.broadcast %c16_i32_56 : i32 to vector<2x128xi32>
    %119 = arith.cmpi sge, %1, %118 : vector<2x128xi32>
    %120 = arith.select %119, %116, %117 : vector<2x128xi1>, vector<2x128xf32>
    %c1_i32_57 = arith.constant 1 : i32
    %121 = tpu.dynamic_rotate %109 by %c1_i32_57 dim 0 : vector<2x128xf32>, i32 -> vector<2x128xf32>
    %c127_i32_58 = arith.constant 127 : i32
    %122 = tpu.dynamic_rotate %121 by %c127_i32_58 dim 1 : vector<2x128xf32>, i32 -> vector<2x128xf32>
    %c1_i32_59 = arith.constant 1 : i32
    %123 = tpu.dynamic_rotate %122 by %c1_i32_59 dim 0 : vector<2x128xf32>, i32 -> vector<2x128xf32>
    %c127_i32_60 = arith.constant 127 : i32
    %124 = vector.broadcast %c127_i32_60 : i32 to vector<2x128xi32>
    %125 = arith.cmpi sge, %1, %124 : vector<2x128xi32>
    %126 = arith.select %125, %122, %123 : vector<2x128xi1>, vector<2x128xf32>
    %c1_i32_61 = arith.constant 1 : i32
    %127 = tpu.dynamic_rotate %109 by %c1_i32_61 dim 1 : vector<2x128xf32>, i32 -> vector<2x128xf32>
    %c1_i32_62 = arith.constant 1 : i32
    %128 = tpu.dynamic_rotate %127 by %c1_i32_62 dim 0 : vector<2x128xf32>, i32 -> vector<2x128xf32>
    %c1_i32_63 = arith.constant 1 : i32
    %129 = vector.broadcast %c1_i32_63 : i32 to vector<2x128xi32>
    %130 = arith.cmpi sge, %1, %129 : vector<2x128xi32>
    %131 = arith.select %130, %127, %128 : vector<2x128xi1>, vector<2x128xf32>
    %c240_i32_64 = arith.constant 240 : i32
    %132 = vector.broadcast %c240_i32_64 : i32 to vector<2x128xi32>
    %133 = arith.cmpi slt, %4, %132 : vector<2x128xi32>
    %cst_65 = arith.constant 0.000000e+00 : f32
    %134 = vector.broadcast %cst_65 : f32 to vector<2x128xf32>
    %135 = arith.select %133, %115, %134 : vector<2x128xi1>, vector<2x128xf32>
    %c16_i32_66 = arith.constant 16 : i32
    %136 = vector.broadcast %c16_i32_66 : i32 to vector<2x128xi32>
    %137 = arith.cmpi sge, %4, %136 : vector<2x128xi32>
    %cst_67 = arith.constant 0.000000e+00 : f32
    %138 = vector.broadcast %cst_67 : f32 to vector<2x128xf32>
    %139 = arith.select %137, %120, %138 : vector<2x128xi1>, vector<2x128xf32>
    %140 = arith.subf %135, %139 : vector<2x128xf32>
    %c15_i32_68 = arith.constant 15 : i32
    %141 = vector.broadcast %c15_i32_68 : i32 to vector<2x128xi32>
    %142 = arith.cmpi slt, %20, %141 : vector<2x128xi32>
    %cst_69 = arith.constant 0.000000e+00 : f32
    %143 = vector.broadcast %cst_69 : f32 to vector<2x128xf32>
    %144 = arith.select %142, %126, %143 : vector<2x128xi1>, vector<2x128xf32>
    %c0_i32_70 = arith.constant 0 : i32
    %145 = vector.broadcast %c0_i32_70 : i32 to vector<2x128xi32>
    %146 = arith.cmpi sgt, %20, %145 : vector<2x128xi32>
    %cst_71 = arith.constant 0.000000e+00 : f32
    %147 = vector.broadcast %cst_71 : f32 to vector<2x128xf32>
    %148 = arith.select %146, %131, %147 : vector<2x128xi1>, vector<2x128xf32>
    %149 = arith.subf %144, %148 : vector<2x128xf32>
    %150 = arith.index_cast %c0_i32_3 : i32 to index
    %c0_72 = arith.constant 0 : index
    %c0_73 = arith.constant 0 : index
    %c0_74 = arith.constant 0 : index
    %151 = vector.load %arg5[%150, %c0_72, %c0_73, %c0_74] : memref<1x1x2x128xf32, #tpu.memory_space<vmem>>, vector<1x1x2x128xf32>
    %152 = vector.shape_cast %151 : vector<1x1x2x128xf32> to vector<2x128xf32>
    %153 = vector.shape_cast %140 : vector<2x128xf32> to vector<1x1x2x128xf32>
    tpu.vector_store %arg5[%150, %c0_72, %c0_73, %c0_74], %153 {strides = array<i32>} : memref<1x1x2x128xf32, #tpu.memory_space<vmem>>, vector<1x1x2x128xf32>,
    %154 = arith.index_cast %c0_i32_3 : i32 to index
    %c0_75 = arith.constant 0 : index
    %c0_76 = arith.constant 0 : index
    %c0_77 = arith.constant 0 : index
    %155 = vector.load %arg6[%154, %c0_75, %c0_76, %c0_77] : memref<1x1x2x128xf32, #tpu.memory_space<vmem>>, vector<1x1x2x128xf32>
    %156 = vector.shape_cast %155 : vector<1x1x2x128xf32> to vector<2x128xf32>
    %157 = vector.shape_cast %149 : vector<2x128xf32> to vector<1x1x2x128xf32>
    tpu.vector_store %arg6[%154, %c0_75, %c0_76, %c0_77], %157 {strides = array<i32>} : memref<1x1x2x128xf32, #tpu.memory_space<vmem>>, vector<1x1x2x128xf32>,
    %158 = arith.mulf %140, %140 : vector<2x128xf32>
    %159 = arith.mulf %149, %149 : vector<2x128xf32>
    %160 = arith.addf %158, %159 : vector<2x128xf32>
    %cst_78 = arith.constant 9.99999997E-7 : f32
    %161 = vector.broadcast %cst_78 : f32 to vector<2x128xf32>
    %162 = arith.addf %160, %161 : vector<2x128xf32>
    %163 = math.sqrt %162 : vector<2x128xf32>
    %164 = arith.subf %92, %163 : vector<2x128xf32>
    %165 = math.absf %164 : vector<2x128xf32>
    %166 = arith.addf %21, %165 : vector<2x128xf32>
    %c1_i32_79 = arith.constant 1 : i32
    %167 = vector.shape_cast %166 : vector<2x128xf32> to vector<1x2x128xf32>
    %cst_80 = arith.constant dense<0.000000e+00> : vector<1xf32>
    %168 = vector.multi_reduction <add>, %167, %cst_80 [1, 2] : vector<1x2x128xf32> to vector<1xf32>
    %169 = vector.shape_cast %168 : vector<1xf32> to vector<1x1x1xf32>
    %170 = vector.extract %169[0, 0, 0] : f32 from vector<1x1x1xf32>
    %171 = vector.broadcast %170 : f32 to vector<1x1x1xf32>
    %c0_81 = arith.constant 0 : index
    %c0_82 = arith.constant 0 : index
    %c0_83 = arith.constant 0 : index
    %172 = vector.load %arg7[%c0_81, %c0_82, %c0_83] : memref<1x1x1xf32, #tpu.memory_space<vmem>>, vector<1x1x1xf32>
    tpu.vector_store %arg7[%c0_81, %c0_82, %c0_83], %171 {strides = array<i32>} : memref<1x1x1xf32, #tpu.memory_space<vmem>>, vector<1x1x1xf32>,
    return
  }
  func.func @transform_0(%arg0: i32) -> (i32, i32, i32, i32) {
    %c0_i32 = arith.constant 0 : i32
    %c0_i32_0 = arith.constant 0 : i32
    %c0_i32_1 = arith.constant 0 : i32
    %c0_i32_2 = arith.constant 0 : i32
    return %arg0, %c0_i32, %c0_i32_0, %c0_i32_1 : i32, i32, i32, i32
  }
  func.func @transform_1(%arg0: i32) -> (i32, i32, i32, i32) {
    %c0_i32 = arith.constant 0 : i32
    %c0_i32_0 = arith.constant 0 : i32
    %c0_i32_1 = arith.constant 0 : i32
    %c0_i32_2 = arith.constant 0 : i32
    return %arg0, %c0_i32, %c0_i32_0, %c0_i32_1 : i32, i32, i32, i32
  }
  func.func @transform_2(%arg0: i32) -> (i32, i32, i32, i32) {
    %c0_i32 = arith.constant 0 : i32
    %c0_i32_0 = arith.constant 0 : i32
    %c0_i32_1 = arith.constant 0 : i32
    %c0_i32_2 = arith.constant 0 : i32
    return %arg0, %c0_i32, %c0_i32_0, %c0_i32_1 : i32, i32, i32, i32
  }
  func.func @transform_3(%arg0: i32) -> (i32, i32, i32, i32) {
    %c0_i32 = arith.constant 0 : i32
    %c0_i32_0 = arith.constant 0 : i32
    %c0_i32_1 = arith.constant 0 : i32
    %c0_i32_2 = arith.constant 0 : i32
    return %arg0, %c0_i32, %c0_i32_0, %c0_i32_1 : i32, i32, i32, i32
  }
  func.func @transform_4(%arg0: i32) -> (i32, i32, i32, i32) {
    %c0_i32 = arith.constant 0 : i32
    %c0_i32_0 = arith.constant 0 : i32
    %c0_i32_1 = arith.constant 0 : i32
    %c0_i32_2 = arith.constant 0 : i32
    return %arg0, %c0_i32, %c0_i32_0, %c0_i32_1 : i32, i32, i32, i32
  }
  func.func @transform_5(%arg0: i32) -> (i32, i32, i32, i32) {
    %c0_i32 = arith.constant 0 : i32
    %c0_i32_0 = arith.constant 0 : i32
    %c0_i32_1 = arith.constant 0 : i32
    %c0_i32_2 = arith.constant 0 : i32
    return %arg0, %c0_i32, %c0_i32_0, %c0_i32_1 : i32, i32, i32, i32
  }
  func.func @transform_6(%arg0: i32) -> (i32, i32, i32) {
    %c0_i32 = arith.constant 0 : i32
    %c0_i32_0 = arith.constant 0 : i32
    %c0_i32_1 = arith.constant 0 : i32
    return %arg0, %c0_i32, %c0_i32_0 : i32, i32, i32
  }
}

</mosaic_0001>

<bundles_post_ra>
// kernel: tpu_custom_call.1
= control target key start
LH: loop header
LB: loop body
LE: loop exit
PB: predicated region body
PF: predicated region fallthrough
CT: control target
= control target key end

     0   :  { %s1605_s0 = inlined_call_operand.hbm [shape: f32[2,3,2,128], index: 0, kind: input, shape index: {}]   ;;  %s1606_s1 = inlined_call_operand.hbm [shape: f32[2,3,2,128], index: 1, kind: input, shape index: {}]   ;;  %s1607_s2 = inlined_call_operand.hbm [shape: f32[2,1,2,128], index: 2, kind: output, shape index: {0}]   ;;  %s1608_s3 = inlined_call_operand.hbm [shape: f32[2,1,2,128], index: 3, kind: output, shape index: {1}]   ;;  %s1609_s4 = inlined_call_operand.hbm [shape: f32[2,1,2,128], index: 4, kind: output, shape index: {2}]   ;;  %s1610_s5 = inlined_call_operand.hbm [shape: f32[2,1,2,128], index: 5, kind: output, shape index: {3}]   ;;  %s1611_s6 = inlined_call_operand.vmem [shape: f32[2,1,1], index: 6, kind: output, shape index: {4}]  }
   0x1   :  { %1618 = sst [smem:[#allocation18_spill]] %s1605_s0 }
   0x2   :  { %1619 = sst [smem:[#allocation19_spill]] %s1606_s1 }
   0x3   :  { %12 = vsyncpa [#allocation3], 0 }
   0x4   :  { %14 = vsyncpa [#allocation3 + $0x1], 0 }
   0x5   :  { %15 = vsyncpa [#allocation6], 0 }
   0x6   :  { %17 = vsyncpa [#allocation6 + $0x1], 0 }
   0x7   :  { %18 = vsyncpa [#allocation4], 0 }
   0x8   :  { %20 = vsyncpa [#allocation4 + $0x1], 0 }
   0x9   :  { %21 = vsyncpa [#allocation9], 0 }
   0xa   :  { %23 = vsyncpa [#allocation9 + $0x1], 0 }
   0xb   :  { %24 = vsyncpa [#allocation12], 0 }
   0xc   :  { %26 = vsyncpa [#allocation12 + $0x1], 0  ;;  %s1199_s21 = smov 0   ;;  %s1201_s22 = smov 0  }
   0xd   :  { %s1203_s23 = smov 0   ;;  %s1205_s24 = smov 0  }
   0xe LB: > { %s1220_s25 = sadd.s32 4294967295, %s1150_s24   ;;  %s1612_s26 = sadd.s32 4294967294, %s1150_s24   ;;  %s1150_s24 = sphi %s1205_s24, %s1642_s24   ;;  %s1146_s23 = sphi %s1203_s23, %s1641_s23   ;;  %s1142_s22 = sphi %s1201_s22, %s1640_s22   ;;  %s1138_s21 = sphi %s1199_s21, %s1639_s21  }
   0xf   : > { %s1224_s27 = sadd.s32 1, %s1150_s24   ;;  %s39_s28 = sadd.s32 1, %s1146_s23 }
  0x10   : > { %s36_s29 = ssub.s32 %s1150_s24, %s1224_s27  ;;  %p46_p0 = scmp.ne.s32.totalorder %s1146_s23, %s1142_s22 }
  0x11   : > { %p37_p1 = scmp.eq.s32.totalorder %s36_s29, 0  ;;  %p47_p2 = scmp.eq.s32.totalorder %s1150_s24, 0 }
  0x12   : > { %p52_p3 = scmp.ne.s32.totalorder %s1142_s22, %s1138_s21  ;;  %p53_p4 = scmp.eq.s32.totalorder %s1220_s25, 0 }
  0x13   : > { %s1236_s30 = scalar_select %p37_p1, %s1146_s23, %s39_s28  }
  0x14   : > { %p48_p5 = por %p47_p2, %p46_p0  ;;  %p1238_p6 = por %p53_p4, %p52_p3 }
  0x15   : > { %p102_p7 = scmp.eq.s32.totalorder %s1220_s25, 1  ;;  %p108_p8 = scmp.eq.s32.totalorder %s1612_s26, 1 }
  0x16   : > { %s1620_s7 = scalar_select %p1238_p6, 1, 0 }
  0x17   : > { %p884_p10 = scmp.lt.s32.totalorder %s1150_s24, 2  ;;  %p1247_p11 = por %p102_p7, %p46_p0 }
  0x18   : > { %p1251_p12 = por %p108_p8, %p52_p3  ;;  %s1256_s10 = sand.u32 1, %s1146_s23  }
  0x19   : > { %s1621_s8 = scalar_select %p1247_p11, 1, 0 }
  0x1a   : > { %s1622_s9 = scalar_select %p1251_p12, 1, 0 }
  0x1b   : > { %s846_s11 = smul.u32 96, %s1150_s24  ;;  %s1623_s0 = sld [smem:[#allocation18_spill]] }
  0x1c   : > { %s845_s12 = smul.u32 6, %s1256_s10  ;;  %p1267_p13 = pnand %p884_p10, %p48_p5 }
  0x1d   : > { %s233_s19 = scalar_lea.sflag [#allocation3], %s1256_s10 }
  0x1e   : > { %s236_s17 = scalar_lea.vmem [#allocation2], %s845_s12  ;;  %p930_p1 = pneg %p1267_p13 }
  0x1f   : > { %s243_s18 = sshll.u32 %s236_s17, 4  ;;  %s1273_s18 = int_to_ptr.vmem [resolvable:$true] %s243_s18 }
  0x21   : > { %s1265_s15 = scalar_lea.hbm %s1623_s0, %s846_s11  ;;  %s933_s13 = scalar_lea.hbm %s1623_s0, 192 }
  0x22   : > { %s928_s20 = scalar_lea.hbm %s1265_s15, 96  ;;  %p934_p4 = scmp.lt.u32.totalorder %s1265_s15, %s1623_s0 }
  0x23   : > { %p929_p0 = scmp.ne.s32.totalorder %s1265_s15, %s928_s20  ;;  %p935_p5 = scmp.lt.u32.totalorder %s933_s13, %s928_s20 }
  0x24   : > { %p937_p8 = scmp.lt.u32.totalorder %s928_s20, %s1265_s15 }
  0x25   : > { %p931_p2 = pnand %p930_p1, %p929_p0  ;;  %p936_p7 = por %p935_p5, %p934_p4 }
  0x27   : > { %p932_p3 = pneg %p931_p2  ;;  %p938_p10 = por %p937_p8, %p936_p7 }
  0x29   : > { %p939_p9 = pnand %p938_p10, %p932_p3 }
  0x2b   : > { %942 = shalt.err (!%p939_p9)
}
  0x2c   : > { %s943_s17 = scalar_lea.vmem %s1273_s18, 96  ;;  %s1152_s28 = smov [#allocation2]  }
  0x2d   : > { %p944_p0 = scmp.ne.s32.totalorder %s1273_s18, %s943_s17  ;;  %s948_s29 = sshll.u32 %s1152_s28, 4  ;;  %s949_s29 = int_to_ptr.vmem [resolvable:$false] %s948_s29 }
  0x2e   : > { %s950_s26 = scalar_lea.vmem %s949_s29, 192  ;;  %p951_p11 = scmp.lt.s32.totalorder %s1273_s18, %s949_s29 }
  0x2f   : > { %p946_p2 = pnand %p944_p0, %p930_p1  ;;  %p952_p4 = scmp.lt.s32.totalorder %s950_s26, %s943_s17 }
  0x31   : > { %p947_p12 = pneg %p946_p2  ;;  %p953_p5 = por %p952_p4, %p951_p11 }
  0x33   : > { %p954_p7 = pnand %p953_p5, %p947_p12 }
  0x35   : > { %957 = shalt.err (!%p954_p7)
}
  0x36   : > { %s1614_s20 = smov 32   ;;  %s1154_s13 = smov 2  }
  0x37   : > { %867 = dma.hbm_to_vmem [thread:$0]  (!%p1267_p13), %s1265_s15, 96, %s1273_s18, %s233_s19, %s1614_s20, %s1614_s20, %s1154_s13  }
  0x38   : > { %p826_p9 = scmp.ge.s32.totalorder %s1150_s24, 1  ;;  %p272_p11 = scmp.lt.s32.totalorder %s1150_s24, 3 }
  0x39   : > { %s1626_s1 = sld [smem:[#allocation19_spill]]  ;;  %s257_s26 = scalar_lea.vmem [#allocation5], %s845_s12 }
  0x3a   : > { %p1308_p12 = pnand %p826_p9, %p272_p11  ;;  %s264_s0 = sshll.u32 %s257_s26, 4  ;;  %s1321_s0 = int_to_ptr.vmem [resolvable:$true] %s264_s0 }
  0x3b   : > { %s254_s15 = scalar_lea.sflag [#allocation6], %s1256_s10 }
  0x3f   : > { %s1317_s29 = scalar_lea.hbm %s1626_s1, %s846_s11  ;;  %s963_s11 = scalar_lea.hbm %s1626_s1, 192 }
  0x40   : > { %s958_s18 = scalar_lea.hbm %s1317_s29, 96  ;;  %p964_p0 = scmp.lt.u32.totalorder %s1317_s29, %s1626_s1 }
  0x41   : > { %p959_p3 = scmp.ne.s32.totalorder %s1317_s29, %s958_s18  ;;  %p965_p2 = scmp.lt.u32.totalorder %s963_s11, %s958_s18 }
  0x42   : > { %p967_p5 = scmp.lt.u32.totalorder %s958_s18, %s1317_s29 }
  0x43   : > { %p961_p8 = pnand %p959_p3, %p930_p1  ;;  %p966_p4 = por %p965_p2, %p964_p0 }
  0x45   : > { %p962_p10 = pneg %p961_p8  ;;  %p968_p7 = por %p967_p5, %p966_p4 }
  0x47   : > { %p969_p9 = pnand %p968_p7, %p962_p10 }
  0x49   : > { %972 = shalt.err (!%p969_p9)
}
  0x4a   : > { %s973_s12 = scalar_lea.vmem %s1321_s0, 96  ;;  %s1155_s26 = smov [#allocation5]  }
  0x4b   : > { %p974_p11 = scmp.ne.s32.totalorder %s1321_s0, %s973_s12  ;;  %s978_s19 = sshll.u32 %s1155_s26, 4  ;;  %s979_s19 = int_to_ptr.vmem [resolvable:$false] %s978_s19 }
  0x4c   : > { %s980_s20 = scalar_lea.vmem %s979_s19, 192  ;;  %p981_p6 = scmp.lt.s32.totalorder %s1321_s0, %s979_s19 }
  0x4d   : > { %p976_p3 = pnand %p974_p11, %p930_p1  ;;  %p982_p0 = scmp.lt.s32.totalorder %s980_s20, %s973_s12 }
  0x4f   : > { %p977_p8 = pneg %p976_p3  ;;  %p983_p2 = por %p982_p0, %p981_p6 }
  0x51   : > { %p984_p4 = pnand %p983_p2, %p977_p8 }
  0x53   : > { %987 = shalt.err (!%p984_p4)
}
  0x54   : > { %s1627_s18 = smov 32   ;;  %276 = sbr.rel (%p1308_p12) target bundleno = 476 (0x1dc), region = 28 }
  0x55   : > { %870 = dma.hbm_to_vmem [thread:$0]  (!%p1267_p13), %s1317_s29, 96, %s1321_s0, %s254_s15, %s1627_s18, %s1627_s18, %s1154_s13  }
  0x56   : > { %s1355_s17 = sand.u32 (!%p1308_p12), 1, %s1142_s22   ;;  %p1628_p6 = scmp.ne.s32.totalorder (!%p1308_p12), %s1620_s7, 0 }
  0x57   : > { %s849_s11 = smul.u32 (!%p1308_p12), 6, %s1355_s17  ;;  %s279_s28 = scalar_lea.sflag (!%p1308_p12), [#allocation3], %s1355_s17 }
  0x59   : > { %s282_s16 = scalar_lea.vmem (!%p1308_p12), [#allocation2], %s849_s11 }
  0x5b   : > { %1117 = dma.done.wait (%p1628_p6), %s279_s28, 96  }
  0x5c   : > { %1119 = vsyncadd (%p1628_p6), %s279_s28, 4294967200  ;;  %s288_s0 = scalar_lea.sflag [#allocation6], %s1355_s17  ;;  %s291_s10 = scalar_lea.vmem [#allocation5], %s849_s11 }
  0x5d   : > { %1121 = dma.done.wait (%p1628_p6), %s288_s0, 96  }
  0x5e   : > { %1123 = vsyncadd (%p1628_p6), %s288_s0, 4294967200  ;;  %v364_v0 = vld [vmem:[%s282_s16] sm:$0x3]  ;;  %v831_v1 = vld [vmem:[%s282_s16 + $0x2] sm:$0x3]  ;;  %vm374_vm0 = vcmask 1047554   ;;  %v346_v26 = vlaneseq }
  0x5f   : > { %v832_v2 = vld [vmem:[%s282_s16 + $0x4] sm:$0x3]  ;;  %v365_v3 = vmul.f32 0.25678906, %v364_v0  ;;  %v368_v4 = vmul.f32 0.50412893, %v831_v1 }
  0x60   : > { %v372_v5 = vmul.f32 0.09790625, %v832_v2  ;;  %v449_v6 = vld [vmem:[%s291_s10] sm:$0x3]  ;;  %v833_v7 = vld [vmem:[%s291_s10 + $0x2] sm:$0x3] }
  0x61   : > { %v834_v8 = vld [vmem:[%s291_s10 + $0x4] sm:$0x3]  ;;  %v369_v9 = vadd.f32 %v368_v4, %v365_v3  ;;  %v450_v10 = vmul.f32 0.25678906, %v449_v6  ;;  %v453_v11 = vmul.f32 0.50412893, %v833_v7 }
  0x62   : > { %v457_v12 = vmul.f32 0.09790625, %v834_v8  ;;  %s1156_s13 = smov 1   ;;  %s1157_s7 = smov 16   ;;  %v347_v27 = vshrl.u32 %v346_v26, 7  ;;  %v1372_v32 = vand.u32 127, %v346_v26 }
  0x63   : > { %v373_v13 = vadd.f32 %v372_v5, %v369_v9  ;;  %v454_v14 = vadd.f32 %v453_v11, %v450_v10  ;;  %s1158_s14 = smov 127   ;;  %s1159_s29 = smov 112   ;;  %vm528_vm13 = vcmask 1041408  }
  0x64   : > { %v350_v33 = vmul.u32 128, %v347_v27  ;;  %v356_v42 = vand.u32 15, %v1372_v32  ;;  %vm421_vm1 = vcmp.ge.s32.totalorder %v1372_v32, 1  ;;  %vm399_vm2 = vcmp.ge.s32.totalorder %v1372_v32, 16  ;;  %s1409_s15 = sshll.u32 %s1355_s17, 1  ;;  %s547_s18 = sand.u32 1, %s1220_s25  }
  0x65   : > { %415 = vrot.lane.b32.xlu1 %v373_v13, %s1156_s13  ;;  %393 = vrot.lane.b32.xlu0 %v373_v13, %s1157_s7  ;;  %v458_v15 = vadd.f32 %v457_v12, %v454_v14  ;;  %v375_v16 = vrot.slane %v373_v13, 6  ;;  %vm410_vm5 = vcmp.ge.s32.totalorder %v1372_v32, 127  ;;  %vm388_vm7 = vcmp.ge.s32.totalorder %v1372_v32, 112  ;;  %s323_s12 = scalar_lea.vmem [#allocation8], %s1409_s15  ;;  %s316_s26 = scalar_lea.vmem [#allocation7], %s1409_s15 }
  0x66   : > { %v1377_v40 = vadd.s32 %v350_v33, %v1372_v32  ;;  %vm1386_vm4 = vcmp.gt.s32.totalorder %v356_v42, 0  ;;  %vm1394_vm6 = vcmp.lt.s32.totalorder %v356_v42, 15  ;;  %s1617_s19 = scalar_lea.vmem [#allocation10], %s1409_s15  ;;  %s1616_s20 = scalar_lea.vmem [#allocation11], %s1409_s15 }
  0x67   : > { %v376_v17 = vsel %vm374_vm0, %v375_v16, %v373_v13  ;;  %v459_v18 = vrot.slane %v458_v15, 6  ;;  %s1457_s11 = sshll.u32 %s1220_s25, 5  ;;  %s587_s10 = sshll.u32 %s323_s12, 4  ;;  %s1467_s10 = int_to_ptr.vmem [resolvable:$true] %s587_s10 }
  0x68   : > { %v377_v19 = vrot.slane %v376_v17, 6  ;;  %vm428_vm3 = vcmp.ge.s32.totalorder %v1377_v40, 16  ;;  %vm426_vm8 = vcmp.lt.s32.totalorder %v1377_v40, 240  ;;  %s1463_s0 = scalar_lea.hbm %s1608_s3, %s1457_s11  ;;  %p1633_p1 = scmp.ne.s32.totalorder %s1621_s8, 0 }
  0x69   : > { %476 = vrot.lane.b32.xlu1 %v458_v15, %s1157_s7  ;;  %v460_v20 = vsel %vm374_vm0, %v459_v18, %v458_v15  ;;  %s1160_s28 = smov [#allocation8]  }
  0x6a   : > { %v378_v21 = vsel %vm374_vm0, %v377_v19, %v373_v13  ;;  %v461_v22 = vrot.slane %v460_v20, 6  ;;  %s992_s16 = sshll.u32 %s1160_s28, 4  ;;  %s993_s16 = int_to_ptr.vmem [resolvable:$false] %s992_s16 }
  0x6b   : > { %v380_v23 = vrot.slane %v378_v21, 1  ;;  %p995_p5 = scmp.lt.s32.totalorder %s1467_s10, %s993_s16 }
  0x6c   : > { %v462_v24 = vsel %vm374_vm0, %v461_v22, %v458_v15 }
  0x6d   : > { %404 = vrot.lane.b32.xlu1 %v380_v23, %s1158_s14  ;;  %382 = vrot.lane.b32.xlu0 %v380_v23, %s1159_s29  ;;  %v464_v25 = vrot.slane %v462_v24, 1 }
  0x71   : > { %496 = vrot.lane.b32.xlu1 %v458_v15, %s1156_s13  ;;  %466 = vrot.lane.b32.xlu0 %v464_v25, %s1159_s29  ;;  %s1475_s29 = scalar_lea.sflag [#allocation9], %s547_s18 }
  0x75   : > { %486 = vrot.lane.b32.xlu0 %v464_v25, %s1158_s14  ;;  %s1473_s14 = scalar_lea.hbm %s1607_s2, %s1457_s11 }
  0xd7   : > { %v416_v28 = vpop.permute.xlu1 %415  ;;  %v394_v29 = vpop.permute.xlu0 %393 }
  0xd8   : > { %v417_v30 = vrot.slane %v416_v28, 6  ;;  %v395_v31 = vrot.slane %v394_v29, 6 }
  0xda   : > { %v418_v34 = vsel %vm374_vm0, %v417_v30, %v416_v28  ;;  %v396_v35 = vsel %vm374_vm0, %v395_v31, %v394_v29 }
  0xdb   : > { %v419_v36 = vrot.slane %v418_v34, 6  ;;  %v397_v37 = vrot.slane %v396_v35, 6  ;;  %v477_v38 = vpop.permute.xlu1 %476 }
  0xdc   : > { %v478_v39 = vrot.slane %v477_v38, 6 }
  0xdd   : > { %v398_v41 = vsel %vm374_vm0, %v397_v37, %v394_v29  ;;  %v420_v43 = vsel %vm374_vm0, %v419_v36, %v416_v28 }
  0xde   : > { %v479_v44 = vsel %vm374_vm0, %v478_v39, %v477_v38  ;;  %v401_v48 = vrot.slane %v398_v41, 1  ;;  %v423_v51 = vrot.slane %v420_v43, 1 }
  0xdf   : > { %v480_v45 = vrot.slane %v479_v44, 6  ;;  %v405_v46 = vpop.permute.xlu1 %404  ;;  %v383_v47 = vpop.permute.xlu0 %382 }
  0xe0   : > { %v406_v49 = vrot.slane %v405_v46, 6  ;;  %v384_v50 = vrot.slane %v383_v47, 6  ;;  %v403_v61 = vsel %vm399_vm2, %v394_v29, %v401_v48  ;;  %v425_v0 = vsel %vm421_vm1, %v416_v28, %v423_v51 }
  0xe1   : > { %v481_v53 = vsel %vm374_vm0, %v480_v45, %v477_v38  ;;  %v429_v8 = vsel %vm428_vm3, %v403_v61, 0.0  ;;  %v434_v14 = vsel %vm1386_vm4, %v425_v0, 0.0 }
  0xe2   : > { %v407_v54 = vsel %vm374_vm0, %v406_v49, %v405_v46  ;;  %v385_v55 = vsel %vm374_vm0, %v384_v50, %v383_v47  ;;  %v483_v1 = vrot.slane %v481_v53, 1 }
  0xe3   : > { %v408_v57 = vrot.slane %v407_v54, 6  ;;  %v386_v58 = vrot.slane %v385_v55, 6  ;;  %v497_v59 = vpop.permute.xlu1 %496  ;;  %v467_v60 = vpop.permute.xlu0 %466 }
  0xe4   : > { %v498_v62 = vrot.slane %v497_v59, 6  ;;  %v468_v63 = vrot.slane %v467_v60, 6  ;;  %v485_v20 = vsel %vm399_vm2, %v477_v38, %v483_v1 }
  0xe5   : > { %v409_v2 = vsel %vm374_vm0, %v408_v57, %v405_v46  ;;  %v387_v3 = vsel %vm374_vm0, %v386_v58, %v383_v47  ;;  %v507_v29 = vsel %vm428_vm3, %v485_v20, 0.0 }
  0xe6   : > { %v412_v4 = vrot.slane %v409_v2, 1  ;;  %v390_v5 = vrot.slane %v387_v3, 1  ;;  %v499_v6 = vsel %vm374_vm0, %v498_v62, %v497_v59  ;;  %v469_v7 = vsel %vm374_vm0, %v468_v63, %v467_v60 }
  0xe7   : > { %v500_v9 = vrot.slane %v499_v6, 6  ;;  %v470_v10 = vrot.slane %v469_v7, 6  ;;  %v487_v11 = vpop.permute.xlu0 %486 }
  0xe8   : > { %v414_v12 = vsel %vm410_vm5, %v405_v46, %v412_v4  ;;  %v392_v13 = vsel %vm388_vm7, %v383_v47, %v390_v5  ;;  %v488_v15 = vrot.slane %v487_v11, 6 }
  0xe9   : > { %v432_v16 = vsel %vm1394_vm6, %v414_v12, 0.0  ;;  %v427_v17 = vsel %vm426_vm8, %v392_v13, 0.0  ;;  %v501_v18 = vsel %vm374_vm0, %v500_v9, %v497_v59  ;;  %v471_v19 = vsel %vm374_vm0, %v470_v10, %v467_v60 }
  0xea   : > { %v430_v21 = vsub.f32 %v427_v17, %v429_v8  ;;  %v435_v22 = vsub.f32 %v432_v16, %v434_v14  ;;  %v473_v23 = vrot.slane %v471_v19, 1  ;;  %v489_v24 = vsel %vm374_vm0, %v488_v15, %v487_v11 }
  0xeb   : > { %v503_v27 = vrot.slane %v501_v18, 1  ;;  %v490_v31 = vrot.slane %v489_v24, 6 }
  0xec   : > { %v438_v25 = vmul.f32 %v430_v21, %v430_v21  ;;  %v439_v26 = vmul.f32 %v435_v22, %v435_v22  ;;  %v475_v28 = vsel %vm388_vm7, %v467_v60, %v473_v23  ;;  %437 = vst [vmem:[%s323_s12] sm:$0x3] %v435_v22  ;;  %436 = vst [vmem:[%s316_s26] sm:$0x3] %v430_v21  ;;  %s994_s12 = scalar_lea.vmem %s993_s16, 64 }
  0xed   : > { %v506_v30 = vsel %vm426_vm8, %v475_v28, 0.0  ;;  %v491_v35 = vsel %vm374_vm0, %v490_v31, %v487_v11  ;;  %v505_v36 = vsel %vm421_vm1, %v497_v59, %v503_v27 }
  0xee   : > { %v440_v33 = vadd.f32 %v439_v26, %v438_v25  ;;  %v508_v34 = vsub.f32 %v506_v30, %v507_v29  ;;  %v493_v37 = vrot.slane %v491_v35, 1  ;;  %v510_v40 = vsel %vm1386_vm4, %v505_v36, 0.0 }
  0xf0   : > { %512 = vst [vmem:[%s1617_s19] sm:$0x3] %v508_v34  ;;  %v441_v38 = vadd.f32 1e-06, %v440_v33  ;;  %v495_v39 = vsel %vm410_vm5, %v487_v11, %v493_v37  ;;  %v514_v43 = vmul.f32 %v508_v34, %v508_v34 }
  0xf1   : > { %v509_v41 = vsel %vm1394_vm6, %v495_v39, 0.0 }
  0xf2   : > { %v511_v42 = vsub.f32 %v509_v41, %v510_v40  ;;  %924 = vrsqrt.f32 %v441_v38  ;;  %vm444_vm9 = vcmp.eq.f32.partialorder %v441_v38, inf  ;;  %v447_v51 = vand.u32 2147483648, %v441_v38 }
  0xf3   : > { %vm446_vm11 = vcmp.eq.f32.partialorder %v441_v38, 0.0 }
  0xf4   : > { %v515_v44 = vmul.f32 %v511_v42, %v511_v42  ;;  %513 = vst [vmem:[%s1616_s20] sm:$0x3] %v511_v42  ;;  %s988_s20 = scalar_lea.vmem %s1467_s10, 32 }
  0xf5   : > { %p989_p13 = scmp.ne.s32.totalorder %s1467_s10, %s988_s20  ;;  %p996_p7 = scmp.lt.s32.totalorder %s994_s12, %s988_s20 }
  0xf6   : > { %v516_v45 = vadd.f32 %v515_v44, %v514_v43 }
  0xf7   : > { %p990_p12 = pnand %p989_p13, %p1633_p1  ;;  %p997_p9 = por %p996_p7, %p995_p5 }
  0xf8   : > { %v517_v46 = vadd.f32 1e-06, %v516_v45 }
  0xf9   : > { %p991_p10 = pneg %p990_p12 }
  0xfa   : > { %926 = vrsqrt.f32 %v517_v46  ;;  %vm520_vm10 = vcmp.eq.f32.partialorder %v517_v46, inf  ;;  %v523_v52 = vand.u32 2147483648, %v517_v46  ;;  %vm522_vm12 = vcmp.eq.f32.partialorder %v517_v46, 0.0 }
  0xfb   : > { %p998_p11 = pnand %p997_p9, %p991_p10 }
  0xfc   : > { %v925_v47 = vpop.eup %924 }
  0xfd   : > { %v443_v48 = vmul.f32 %v925_v47, %v441_v38 }
  0xff   : > { %v445_v49 = vsel %vm444_vm9, %v441_v38, %v443_v48 }
 0x100   : > { %v448_v54 = vsel %vm446_vm11, %v447_v51, %v445_v49 }
 0x104   : > { %v927_v32 = vpop.eup %926 }
 0x105   : > { %v519_v50 = vmul.f32 %v927_v32, %v517_v46 }
 0x107   : > { %v521_v53 = vsel %vm520_vm10, %v517_v46, %v519_v50 }
 0x108   : > { %v524_v55 = vsel %vm522_vm12, %v523_v52, %v521_v53 }
 0x109   : > { %v525_v56 = vsub.f32 %v448_v54, %v524_v55 }
 0x10b   : > { %v526_v57 = vand.u32 2147483647, %v525_v56 }
 0x10d   : > { %v529_v58 = vsel %vm528_vm13, %v526_v57, 0.0 }
 0x10e   : > { %530 = vadd.xlane.f32.xlu0 %v529_v58 }
 0x10f   : > { %1001 = shalt.err (!%p998_p11)
}
 0x110   : > { %s1002_s18 = scalar_lea.hbm %s1463_s0, 32  ;;  %s1006_s28 = scalar_lea.hbm %s1608_s3, 64 }
 0x111   : > { %p1003_p3 = scmp.ne.s32.totalorder %s1463_s0, %s1002_s18  ;;  %p1007_p2 = scmp.lt.u32.totalorder %s1463_s0, %s1608_s3 }
 0x112   : > { %p1008_p4 = scmp.lt.u32.totalorder %s1006_s28, %s1002_s18  ;;  %p1010_p13 = scmp.lt.u32.totalorder %s1002_s18, %s1463_s0 }
 0x113   : > { %p1004_p8 = pnand %p1003_p3, %p1633_p1 }
 0x114   : > { %p1009_p6 = por %p1008_p4, %p1007_p2 }
 0x115   : > { %p1005_p0 = pneg %p1004_p8 }
 0x116   : > { %p1011_p12 = por %p1010_p13, %p1009_p6 }
 0x118   : > { %p1012_p10 = pnand %p1011_p12, %p1005_p0 }
 0x11a   : > { %1015 = shalt.err (!%p1012_p10)
}
 0x11b   : > { %857 = dma.vmem_to_hbm [thread:$0]  (%p1633_p1), %s1467_s10, 32, %s1463_s0, %s1475_s29  }
 0x11c   : > { %s574_s19 = sshll.u32 %s316_s26, 4  ;;  %s1505_s18 = scalar_lea.hbm %s1609_s4, %s1457_s11  ;;  %s1507_s19 = int_to_ptr.vmem [resolvable:$true] %s574_s19 }
 0x11d   : > { %s1634_s13 = scalar_lea.vmem [#allocation10], %s1409_s15  ;;  %s543_s28 = scalar_lea.sflag [#allocation4], %s1355_s17 }
 0x11e   : > { %s1511_s7 = sshll.u32 %s1634_s13, 4  ;;  %s1016_s16 = scalar_lea.vmem %s1507_s19, 32  ;;  %s601_s7 = int_to_ptr.vmem [resolvable:$true] %s1511_s7 }
 0x11f   : > { %p1017_p5 = scmp.ne.s32.totalorder %s1507_s19, %s1016_s16  ;;  %s1161_s26 = smov [#allocation7]  }
 0x120   : > { %s1020_s0 = sshll.u32 %s1161_s26, 4  ;;  %s1021_s0 = int_to_ptr.vmem [resolvable:$false] %s1020_s0 }
 0x121   : > { %p1018_p7 = pnand %p1017_p5, %p1633_p1  ;;  %s1022_s10 = scalar_lea.vmem %s1021_s0, 64 }
 0x122   : > { %p1023_p11 = scmp.lt.s32.totalorder %s1507_s19, %s1021_s0  ;;  %p1024_p3 = scmp.lt.s32.totalorder %s1022_s10, %s1016_s16 }
 0x123   : > { %p1019_p9 = pneg %p1018_p7 }
 0x124   : > { %p1025_p8 = por %p1024_p3, %p1023_p11 }
 0x126   : > { %p1026_p0 = pnand %p1025_p8, %p1019_p9 }
 0x128   : > { %1029 = shalt.err (!%p1026_p0)
}
 0x129   : > { %s1030_s20 = scalar_lea.hbm %s1473_s14, 32  ;;  %s1034_s26 = scalar_lea.hbm %s1607_s2, 64 }
 0x12a   : > { %p1031_p2 = scmp.ne.s32.totalorder %s1473_s14, %s1030_s20  ;;  %p1035_p13 = scmp.lt.u32.totalorder %s1473_s14, %s1607_s2 }
 0x12b   : > { %p1036_p12 = scmp.lt.u32.totalorder %s1034_s26, %s1030_s20  ;;  %p1038_p5 = scmp.lt.u32.totalorder %s1030_s20, %s1473_s14 }
 0x12c   : > { %p1032_p4 = pnand %p1031_p2, %p1633_p1 }
 0x12d   : > { %p1037_p10 = por %p1036_p12, %p1035_p13 }
 0x12e   : > { %p1033_p6 = pneg %p1032_p4 }
 0x12f   : > { %p1039_p7 = por %p1038_p5, %p1037_p10 }
 0x131   : > { %p1040_p9 = pnand %p1039_p7, %p1033_p6 }
 0x133   : > { %1043 = shalt.err (!%p1040_p9)
}
 0x134   : > { %856 = dma.vmem_to_hbm [thread:$0]  (%p1633_p1), %s1507_s19, 32, %s1473_s14, %s543_s28  }
 0x135   : > { %s1044_s16 = scalar_lea.vmem %s601_s7, 32  ;;  %s1162_s1 = smov [#allocation10]  }
 0x136   : > { %p1045_p11 = scmp.ne.s32.totalorder %s601_s7, %s1044_s16  ;;  %s1048_s10 = sshll.u32 %s1162_s1, 4  ;;  %s1049_s10 = int_to_ptr.vmem [resolvable:$false] %s1048_s10 }
 0x137   : > { %s1050_s20 = scalar_lea.vmem %s1049_s10, 64  ;;  %p1051_p0 = scmp.lt.s32.totalorder %s601_s7, %s1049_s10 }
 0x138   : > { %p1046_p3 = pnand %p1045_p11, %p1633_p1  ;;  %p1052_p2 = scmp.lt.s32.totalorder %s1050_s20, %s1044_s16 }
 0x13a   : > { %p1047_p8 = pneg %p1046_p3  ;;  %p1053_p4 = por %p1052_p2, %p1051_p0 }
 0x13c   : > { %p1054_p6 = pnand %p1053_p4, %p1047_p8 }
 0x13e   : > { %1057 = shalt.err (!%p1054_p6)
}
 0x13f   : > { %s1058_s14 = scalar_lea.hbm %s1505_s18, 32  ;;  %s1062_s12 = scalar_lea.hbm %s1609_s4, 64 }
 0x140   : > { %p1059_p13 = scmp.ne.s32.totalorder %s1505_s18, %s1058_s14  ;;  %p1063_p5 = scmp.lt.u32.totalorder %s1505_s18, %s1609_s4 }
 0x141   : > { %p1064_p7 = scmp.lt.u32.totalorder %s1062_s12, %s1058_s14  ;;  %p1066_p11 = scmp.lt.u32.totalorder %s1058_s14, %s1505_s18 }
 0x142   : > { %p1060_p12 = pnand %p1059_p13, %p1633_p1 }
 0x143   : > { %p1065_p9 = por %p1064_p7, %p1063_p5 }
 0x144   : > { %p1061_p10 = pneg %p1060_p12 }
 0x145   : > { %p1067_p3 = por %p1066_p11, %p1065_p9 }
 0x147   : > { %p1068_p8 = pnand %p1067_p3, %p1061_p10 }
 0x149   : > { %1071 = shalt.err (!%p1068_p8)
}
 0x14a   : > { %858 = dma.vmem_to_hbm [thread:$0]  (%p1633_p1), %s601_s7, 32, %s1505_s18, %s1475_s29  }
 0x14b   : > { %s1558_s1 = scalar_lea.hbm %s1610_s5, %s1457_s11  ;;  %s1635_s10 = scalar_lea.vmem [#allocation11], %s1409_s15 }
 0x14c   : > { %s613_s20 = sshll.u32 %s1635_s10, 4  ;;  %s558_s14 = scalar_lea.sflag [#allocation12], %s1355_s17  ;;  %s614_s20 = int_to_ptr.vmem [resolvable:$true] %s613_s20 }
 0x14d   : > { %s1072_s19 = scalar_lea.vmem %s614_s20, 32  ;;  %s1163_s28 = smov [#allocation11]  }
 0x14e   : > { %p1073_p0 = scmp.ne.s32.totalorder %s614_s20, %s1072_s19  ;;  %s1076_s12 = sshll.u32 %s1163_s28, 4  ;;  %s1077_s12 = int_to_ptr.vmem [resolvable:$false] %s1076_s12 }
 0x14f   : > { %s1078_s13 = scalar_lea.vmem %s1077_s12, 64  ;;  %p1079_p6 = scmp.lt.s32.totalorder %s614_s20, %s1077_s12 }
 0x150   : > { %p1074_p2 = pnand %p1073_p0, %p1633_p1  ;;  %p1080_p13 = scmp.lt.s32.totalorder %s1078_s13, %s1072_s19 }
 0x152   : > { %p1075_p4 = pneg %p1074_p2  ;;  %p1081_p12 = por %p1080_p13, %p1079_p6 }
 0x154   : > { %p1082_p10 = pnand %p1081_p12, %p1075_p4 }
 0x156   : > { %1085 = shalt.err (!%p1082_p10)
}
 0x157   : > { %s1086_s17 = scalar_lea.hbm %s1558_s1, 32  ;;  %s1090_s29 = scalar_lea.hbm %s1610_s5, 64 }
 0x158   : > { %p1087_p5 = scmp.ne.s32.totalorder %s1558_s1, %s1086_s17  ;;  %p1091_p11 = scmp.lt.u32.totalorder %s1558_s1, %s1610_s5 }
 0x159   : > { %p1092_p3 = scmp.lt.u32.totalorder %s1090_s29, %s1086_s17  ;;  %p1094_p0 = scmp.lt.u32.totalorder %s1086_s17, %s1558_s1 }
 0x15a   : > { %p1088_p7 = pnand %p1087_p5, %p1633_p1 }
 0x15b   : > { %p1093_p8 = por %p1092_p3, %p1091_p11 }
 0x15c   : > { %p1089_p9 = pneg %p1088_p7 }
 0x15d   : > { %p1095_p2 = por %p1094_p0, %p1093_p8 }
 0x15f   : > { %p1096_p4 = pnand %p1095_p2, %p1089_p9 }
 0x161   : > { %1099 = shalt.err (!%p1096_p4)
}
 0x162   : > { %859 = dma.vmem_to_hbm [thread:$0]  (%p1633_p1), %s614_s20, 32, %s1558_s1, %s558_s14   ;;  %vm540_vm14 = vcmask 0  }
 0x163   : > { %p343_p6 = scmp.lt.s32.totalorder %s1220_s25, 1 }
 0x165   : > { %s1644_s25 = smov (!%p343_p6, %s1220_s25), 1 }
 0x166   : > { %s345_s16 = scalar_lea.vmem %s1611_s6, %s1644_s25 }
 0x19b   : > { %v531_v59 = vpop.xlane.xlu0 %530 }
 0x19c   : > { %v532_v60 = vrot.slane %v531_v59, 4 }
 0x19e   : > { %v533_v61 = vadd.f32 %v532_v60, %v531_v59 }
 0x1a0   : > { %v534_v62 = vrot.slane %v533_v61, 2 }
 0x1a2   : > { %v535_v63 = vadd.f32 %v534_v62, %v533_v61 }
 0x1a4   : > { %v536_v0 = vrot.slane %v535_v63, 1 }
 0x1a6   : > { %v537_v1 = vadd.f32 %v536_v0, %v535_v63 }
 0x1a8   : > { %850 = vpush %v537_v1 }
 0x1d9   : > { %s851_s8 = spop %850 }
 0x1da   : > { %v539_v2 = vstv %s851_s8 }
 0x1db   : > { %541 = vst.msk [vmem:[%s345_s16] sm:$0x1] %vm540_vm14, %v539_v2 }
 0x1dc PF: > { %s628_s1 = sand.u32 1, %s1138_s21   ;;  %p1636_p1 = scmp.ne.s32.totalorder %s1622_s9, 0 }
 0x1dd   : > { %p1637_p13 = scmp.ge.s32.totalorder %s1150_s24, 2  ;;  %s629_s10 = scalar_lea.sflag [#allocation4], %s628_s1 }
 0x1df   : > { %p872_p12 = pnand %p1637_p13, %p1636_p1 }
 0x1e1   : > { %1125 = dma.done.wait (!%p872_p12), %s629_s10, 32  }
 0x1e2   : > { %1127 = vsyncadd (!%p872_p12), %s629_s10, 4294967264  ;;  %s1638_s20 = sadd.s32 4294967294, %s1150_s24  }
 0x1e3   : > { %s637_s14 = sand.u32 1, %s1638_s20  }
 0x1e4   : > { %s638_s19 = scalar_lea.sflag [#allocation9], %s637_s14 }
 0x1e5   : > { %1129 = dma.done.wait (!%p872_p12), %s638_s19, 64  }
 0x1e6   : > { %1131 = vsyncadd (!%p872_p12), %s638_s19, 4294967232  ;;  %s656_s25 = scalar_lea.sflag [#allocation12], %s628_s1 }
 0x1e7   : > { %1133 = dma.done.wait (!%p872_p12), %s656_s25, 32  }
 0x1e8   : > { %1135 = vsyncadd (!%p872_p12), %s656_s25, 4294967264  ;;  %p29_p10 = scmp.ge.s32.totalorder %s1224_s27, 4   ;;  %s1639_s21 = smov %s1142_s22 }
 0x1e9   : > { %s1640_s22 = smov %s1146_s23  ;;  %s1641_s23 = smov %s1236_s30 }
 0x1ea   : > { %s1642_s24 = smov %s1224_s27  ;;  %31 = sbr.rel (!%p29_p10) target bundleno = 14 (0xe), region = 151 }
 0x1f1   :  { %667 = vsyncpa [#allocation3], 1 }
 0x1f2   :  { %669 = vsyncpa [#allocation3 + $0x1], 1 }
 0x1f3   :  { %670 = vsyncpa [#allocation6], 1 }
 0x1f4   :  { %672 = vsyncpa [#allocation6 + $0x1], 1 }
 0x1f5   :  { %673 = vsyncpa [#allocation4], 1 }
 0x1f6   :  { %675 = vsyncpa [#allocation4 + $0x1], 1 }
 0x1f7   :  { %676 = vsyncpa [#allocation9], 1 }
 0x1f8   :  { %678 = vsyncpa [#allocation9 + $0x1], 1 }
 0x1f9   :  { %679 = vsyncpa [#allocation12], 1 }
 0x1fa   :  { %681 = vsyncpa [#allocation12 + $0x1], 1 }

</bundles_post_ra>
